<compile_context>
chip_gen: v5e
topology: v5e:2x2
jax: 0.10.0
libtpu: 0.0.40
codegen_flags: <defaults>
</compile_context>

<pallas_src>
import functools

import jax
import jax.numpy as jnp
from jax.experimental import pallas as pl
from jax.experimental.pallas import tpu as pltpu

LANE = 128  # TPU lane width: logits / head weight padded to this, outputs lane-dense.


# ----------------------------------------------------------------------------
# Fused kernel:
#   conv (one K=216 matmul) -> bias+ReLU -> global-avg-pool
#   -> classifier matmul -> log-softmax cross-entropy (in-kernel one-hot)
# ----------------------------------------------------------------------------
def fused_forward_kernel(xrows_ref, mbig_ref, cbias_ref, headw_ref, hbias_ref,
                         labels_ref, logits_ref, ce_ref, *, bt, height,
                         num_classes):
    # xrows_ref  : (bt*H, 3*(W+2)*Cin) bf16  row-triple gather of the padded image
    # mbig_ref   : (3*(W+2)*Cin, W*Cout) bf16 banded conv weight (resident)
    # cbias_ref  : (1, W*Cout)  f32  conv bias tiled over w
    # headw_ref  : (W*Cout, 128) bf16 (pool_w * fc_w / (H*W)), classes padded to 128
    # hbias_ref  : (1, 128)     f32  fc bias (padded)
    # labels_ref : (bt, 1)      i32  labels (one-hot built in-kernel)
    # logits_ref : (bt, 128)    f32  lane-dense logits (wrapper slices :num_classes)
    # ce_ref     : (bt, 1)      f32  per-sample cross-entropy

    # 3x3 'same' conv for every output pixel of the tile as ONE dense bf16
    # matmul with f32 accumulation on the MXU: rows = (b, h), lanes = (w, cout).
    y = jnp.dot(xrows_ref[...], mbig_ref[...],
                preferred_element_type=jnp.float32)           # (bt*H, W*Cout)
    y = jnp.maximum(y + cbias_ref[...], 0.0)                  # bias + ReLU (f32)

    # Global average pool: H-direction via an aligned sublane reshape-sum (f32);
    # W-direction pool and the 1/(H*W) scale are folded into headw_ref.
    ncol = y.shape[-1]
    ysum = jnp.sum(y.reshape(bt, height, ncol), axis=1)       # (bt, W*Cout) f32

    # Classifier head (bf16 operands, f32 accumulation).
    logits = jnp.dot(ysum.astype(jnp.bfloat16), headw_ref[...],
                     preferred_element_type=jnp.float32) + hbias_ref[...]
    logits_ref[...] = logits                                  # lane-dense (bt, 128)

    # Cross-entropy with the one-hot built in-kernel.  Padded class lanes are
    # masked with a finite -1e30 (exp underflows to 0; one-hot there is 0).
    cls = jax.lax.broadcasted_iota(jnp.int32, logits.shape, 1)
    onehot = (cls == labels_ref[...]).astype(jnp.float32)
    masked = jnp.where(cls < num_classes, logits, jnp.float32(-1e30))
    m = jnp.max(masked, axis=-1, keepdims=True)
    z = masked - m
    lse = jnp.log(jnp.sum(jnp.exp(z), axis=-1, keepdims=True))
    ce_ref[...] = -jnp.sum(onehot * (z - lse), axis=-1, keepdims=True)


def fused_forward(xrows, mbig, cbias, headw, hbias, labels, *,
                  batch, bt, height, width, cin, hidden, num_classes):
    assert batch % bt == 0
    n_tiles = batch // bt
    krows = 3 * (width + 2) * cin
    ncol = width * hidden
    mt = bt * height
    kernel = functools.partial(fused_forward_kernel, bt=bt, height=height,
                               num_classes=num_classes)
    return pl.pallas_call(
        kernel,
        out_shape=(jax.ShapeDtypeStruct((batch, LANE), jnp.float32),
                   jax.ShapeDtypeStruct((batch, 1), jnp.float32)),
        grid=(n_tiles,),
        in_specs=[
            pl.BlockSpec((mt, krows), lambda i: (i, 0)),     # row-triples per tile
            pl.BlockSpec((krows, ncol), lambda i: (0, 0)),   # conv matrix (resident)
            pl.BlockSpec((1, ncol), lambda i: (0, 0)),       # conv bias (tiled over w)
            pl.BlockSpec((ncol, LANE), lambda i: (0, 0)),    # pooled fc weight
            pl.BlockSpec((1, LANE), lambda i: (0, 0)),       # fc bias
            pl.BlockSpec((bt, 1), lambda i: (i, 0)),         # int32 labels per tile
        ],
        out_specs=(
            pl.BlockSpec((bt, LANE), lambda i: (i, 0)),      # lane-dense logits
            pl.BlockSpec((bt, 1), lambda i: (i, 0)),         # per-sample CE
        ),
        compiler_params=pltpu.CompilerParams(
            dimension_semantics=("parallel",),               # batch tiles -> both v7x TCs
            vmem_limit_bytes=32 * 1024 * 1024),
    )(xrows, mbig, cbias, headw, hbias, labels)


# ----------------------------------------------------------------------------
# BaseNet wrapper (mirrors forward / forward_train / forward_val / loss)
# ----------------------------------------------------------------------------
class BaseNetPallas:
    def __init__(self, in_channels=4, hidden=32, num_classes=10,
                 key=jax.random.PRNGKey(42)):
        assert num_classes <= LANE
        k1, k2, k3, k4 = jax.random.split(key, 4)
        self.cin = in_channels
        self.hidden = hidden
        self.num_classes = num_classes

        # Raw parameters (f32).  All derived / padded / tiled matrices are built
        # from these inside the jitted forward (closed over -> constant-folded).
        self.conv_w = 0.1 * jax.random.normal(
            k1, (3, 3, in_channels, hidden), jnp.float32)
        self.conv_b = 0.01 * jax.random.normal(k2, (hidden,), jnp.float32)
        self.fc_w = 0.1 * jax.random.normal(k3, (hidden, num_classes), jnp.float32)
        self.fc_b = 0.01 * jax.random.normal(k4, (num_classes,), jnp.float32)

        # Jit the entire forward (gather + kernel + metrics) -> single dispatch.
        self._train_jit = jax.jit(self._train_impl)
        self._val_jit = jax.jit(self._val_impl)

    # -- preprocessing (fused under jit) -------------------------------------
    @staticmethod
    def _row_gather(images_nchw):
        # bf16 cast FIRST (halves XLA-side intermediate HBM traffic), NCHW->NHWC
        # fused into the slice gather, 'same' zero pad, then the three padded
        # input rows of every output row are laid side by side:
        #   xrows[b*H + h, kh*(W+2)*C + wp*C + c] = xpad[b, h+kh, wp, c]
        # Only ~1.7x the raw image bytes hit HBM (vs ~16x for 128-lane im2col).
        B, C, H, W = images_nchw.shape
        x = jnp.transpose(images_nchw.astype(jnp.bfloat16), (0, 2, 3, 1))
        xp = jnp.pad(x, ((0, 0), (1, 1), (1, 1), (0, 0)))        # (B, H+2, W+2, C)
        xp = xp.reshape(B, H + 2, (W + 2) * C)
        rows = jnp.concatenate([xp[:, kh:kh + H, :] for kh in range(3)], axis=-1)
        return rows.reshape(B * H, 3 * (W + 2) * C)              # (B*H, 216) bf16

    def _derived(self, H, W):
        # Spatial-size-dependent constants derived from the raw weights; since
        # the weights are concrete closed-over arrays they fold at compile time.
        C, hid, ncls = self.cin, self.hidden, self.num_classes
        Wp = W + 2
        ncol = W * hid
        # Banded conv matrix: mbig[kh*Wp*C + (w+kw)*C + c, w*hid + j] = conv_w[kh,kw,c,j]
        blocks = []
        for kh in range(3):
            m_kh = jnp.zeros((Wp * C, ncol), jnp.float32)
            for kw in range(3):
                band = (jnp.zeros((Wp, W), jnp.float32)
                        .at[jnp.arange(W) + kw, jnp.arange(W)].set(1.0))
                m_kh = m_kh + jnp.kron(band, self.conv_w[kh, kw])
            blocks.append(m_kh)
        mbig = jnp.concatenate(blocks, axis=0).astype(jnp.bfloat16)   # (3*Wp*C, W*hid)
        cbias = jnp.tile(self.conv_b, W).reshape(1, ncol)             # (1, W*hid) f32
        # W-direction pool + 1/(H*W) folded into the classifier weight.
        head = jnp.tile(self.fc_w * (1.0 / (H * W)), (W, 1))          # (W*hid, ncls)
        headw = (jnp.zeros((ncol, LANE), jnp.float32)
                 .at[:, :ncls].set(head).astype(jnp.bfloat16))
        hbias = jnp.zeros((1, LANE), jnp.float32).at[0, :ncls].set(self.fc_b)
        return mbig, cbias, headw, hbias

    @staticmethod
    def _batch_tile(batch):
        # Big tiles amortize the ~0.35us/step pipeline cost (v5e/v6e run the
        # grid as a sequential loop on one TensorCore).  First pass prefers an
        # even tile count >= 2 so the 'parallel' axis splits across v7x's two
        # TCs.  bt is a multiple of 8 whenever the batch is tiled; otherwise we
        # fall back to a single tile equal to the full batch extent (always a
        # legal BlockSpec).  VMEM/step at bt=128: ~2 MiB double-buffered rows
        # + ~4 MiB f32 conv intermediate, well under the 32 MiB scoped budget.
        candidates = (128, 96, 64, 48, 32, 24, 16, 8)
        for bt in candidates:
            if batch % bt == 0 and batch // bt >= 2 and (batch // bt) % 2 == 0:
                return bt
        for bt in candidates:
            if batch % bt == 0:
                return bt
        return batch

    # -- core forward ---------------------------------------------------------
    def _logits_and_loss(self, images, labels):
        B, C, H, W = images.shape
        bt = self._batch_tile(B)
        xrows = self._row_gather(images)
        mbig, cbias, headw, hbias = self._derived(H, W)
        lbl = labels.astype(jnp.int32).reshape(B, 1)
        logits_pad, ce = fused_forward(
            xrows, mbig, cbias, headw, hbias, lbl,
            batch=B, bt=bt, height=H, width=W, cin=C,
            hidden=self.hidden, num_classes=self.num_classes)
        loss = jnp.mean(ce)                                   # mean CE over batch
        return logits_pad[:, :self.num_classes], loss

    def _train_impl(self, images, labels):
        _, loss = self._logits_and_loss(images, labels)
        return {'loss_ce': loss}

    def _val_impl(self, images, labels):
        logits, loss = self._logits_and_loss(images, labels)
        outputs = {'loss_ce': loss}
        # TODO(synk): top-k accuracy uses jax.lax.top_k in plain JAX (no clean
        # Pallas sort/top-k primitive for tiny tensors); metrics stay on device.
        topk = (1, 5)
        _, idx = jax.lax.top_k(logits, max(topk))
        correct = (idx == labels[:, None])
        for k in topk:
            outputs[f'acc{k}'] = 100.0 * jnp.mean(
                jnp.any(correct[:, :k], axis=1).astype(jnp.float32))
        return outputs

    # -- public API mirroring the PyTorch module ------------------------------
    def forward(self, images, labels, mode='train'):
        if mode == 'train':
            return self.forward_train(images, labels)
        elif mode == 'val':
            return self.forward_val(images, labels)
        else:
            raise NotImplementedError

    def forward_train(self, images, labels):
        return self._train_jit(images, labels)

    def forward_val(self, images, labels):
        return self._val_jit(images, labels)


if __name__ == "__main__":
    key = jax.random.PRNGKey(0)
    k_img, k_lbl = jax.random.split(key)

    B, C, H, W = 2, 4, 16, 16
    num_classes = 10
    images = jax.random.normal(k_img, (B, C, H, W), jnp.float32)   # NCHW input
    labels = jax.random.randint(k_lbl, (B,), 0, num_classes)

    net = BaseNetPallas(in_channels=C, hidden=32, num_classes=num_classes,
                        key=jax.random.PRNGKey(42))

    train_out = net.forward(images, labels, mode='train')
    jax.block_until_ready(train_out['loss_ce'])

    val_out = net.forward(images, labels, mode='val')
    jax.block_until_ready((val_out['loss_ce'], val_out['acc1'], val_out['acc5']))

    print("KERNEL_OK")
</pallas_src>

<mosaic_0001>
module attributes {stable_mosaic.version = 11 : i64} {
  func.func @fused_forward_kernel(%arg0: i32, %arg1: memref<32x216xbf16, #tpu.memory_space<vmem>>, %arg2: memref<216x512xbf16, #tpu.memory_space<vmem>>, %arg3: memref<1x512xf32, #tpu.memory_space<vmem>>, %arg4: memref<512x128xbf16, #tpu.memory_space<vmem>>, %arg5: memref<1x128xf32, #tpu.memory_space<vmem>>, %arg6: memref<2x1xi32, #tpu.memory_space<vmem>>, %arg7: memref<2x128xf32, #tpu.memory_space<vmem>>, %arg8: memref<2x1xf32, #tpu.memory_space<vmem>>) attributes {dimension_semantics = [#tpu.dimension_semantics<parallel>], iteration_bounds = array<i64: 1>, scalar_prefetch = 0 : i64, scratch_operands = 0 : i64, tpu.core_type = #tpu.core_type<tc>, window_params = [{transform_indices = @transform_0, window_bounds = array<i64: 32, 216>}, {pipeline_mode = #tpu.pipeline_mode<synchronous>, transform_indices = @transform_1, window_bounds = array<i64: 216, 512>}, {pipeline_mode = #tpu.pipeline_mode<synchronous>, transform_indices = @transform_2, window_bounds = array<i64: 1, 512>}, {pipeline_mode = #tpu.pipeline_mode<synchronous>, transform_indices = @transform_3, window_bounds = array<i64: 512, 128>}, {pipeline_mode = #tpu.pipeline_mode<synchronous>, transform_indices = @transform_4, window_bounds = array<i64: 1, 128>}, {transform_indices = @transform_5, window_bounds = array<i64: 2, 1>}, {transform_indices = @transform_6, window_bounds = array<i64: 2, 128>}, {transform_indices = @transform_7, window_bounds = array<i64: 2, 1>}]} {
    %c0 = arith.constant 0 : index
    %c0_0 = arith.constant 0 : index
    %0 = vector.load %arg1[%c0, %c0_0] : memref<32x216xbf16, #tpu.memory_space<vmem>>, vector<32x216xbf16>
    %c0_1 = arith.constant 0 : index
    %c0_2 = arith.constant 0 : index
    %1 = vector.load %arg2[%c0_1, %c0_2] : memref<216x512xbf16, #tpu.memory_space<vmem>>, vector<216x512xbf16>
    %cst = arith.constant dense<0.000000e+00> : vector<32x512xf32>
    %2 = tpu.matmul %0, %1, %cst {dimension_numbers = #tpu.dot_dimension_numbers<[1], [0], [0], [1], [0, 0, 1, 1], [], []>} : vector<32x216xbf16>, vector<216x512xbf16>, vector<32x512xf32> -> vector<32x512xf32>
    %c0_3 = arith.constant 0 : index
    %c0_4 = arith.constant 0 : index
    %3 = vector.load %arg3[%c0_3, %c0_4] : memref<1x512xf32, #tpu.memory_space<vmem>>, vector<1x512xf32>
    %4 = vector.broadcast %3 : vector<1x512xf32> to vector<32x512xf32>
    %5 = arith.addf %2, %4 : vector<32x512xf32>
    %cst_5 = arith.constant 0.000000e+00 : f32
    %6 = vector.broadcast %cst_5 : f32 to vector<32x512xf32>
    %7 = arith.maximumf %5, %6 : vector<32x512xf32>
    %8 = vector.shape_cast %7 : vector<32x512xf32> to vector<2x16x512xf32>
    %cst_6 = arith.constant dense<0.000000e+00> : vector<2x512xf32>
    %9 = vector.multi_reduction <add>, %8, %cst_6 [1] : vector<2x16x512xf32> to vector<2x512xf32>
    %10 = arith.truncf %9 : vector<2x512xf32> to vector<2x512xbf16>
    %c0_7 = arith.constant 0 : index
    %c0_8 = arith.constant 0 : index
    %11 = vector.load %arg4[%c0_7, %c0_8] : memref<512x128xbf16, #tpu.memory_space<vmem>>, vector<512x128xbf16>
    %cst_9 = arith.constant dense<0.000000e+00> : vector<2x128xf32>
    %12 = tpu.matmul %10, %11, %cst_9 {dimension_numbers = #tpu.dot_dimension_numbers<[1], [0], [0], [1], [0, 0, 1, 1], [], []>} : vector<2x512xbf16>, vector<512x128xbf16>, vector<2x128xf32> -> vector<2x128xf32>
    %c0_10 = arith.constant 0 : index
    %c0_11 = arith.constant 0 : index
    %13 = vector.load %arg5[%c0_10, %c0_11] : memref<1x128xf32, #tpu.memory_space<vmem>>, vector<1x128xf32>
    %14 = vector.broadcast %13 : vector<1x128xf32> to vector<2x128xf32>
    %15 = arith.addf %12, %14 : vector<2x128xf32>
    %c0_12 = arith.constant 0 : index
    %c0_13 = arith.constant 0 : index
    %16 = vector.load %arg7[%c0_12, %c0_13] : memref<2x128xf32, #tpu.memory_space<vmem>>, vector<2x128xf32>
    tpu.vector_store %arg7[%c0_12, %c0_13], %15 {strides = array<i32>} : memref<2x128xf32, #tpu.memory_space<vmem>>, vector<2x128xf32>,
    %17 = tpu.iota {dimensions = array<i32: 1>} : vector<2x128xi32>
    %c0_14 = arith.constant 0 : index
    %c0_15 = arith.constant 0 : index
    %18 = vector.load %arg6[%c0_14, %c0_15] : memref<2x1xi32, #tpu.memory_space<vmem>>, vector<2x1xi32>
    %19 = vector.broadcast %18 : vector<2x1xi32> to vector<2x128xi32>
    %20 = arith.cmpi eq, %17, %19 : vector<2x128xi32>
    %21 = arith.extui %20 : vector<2x128xi1> to vector<2x128xi32>
    %22 = arith.sitofp %21 : vector<2x128xi32> to vector<2x128xf32>
    %c10_i32 = arith.constant 10 : i32
    %23 = vector.broadcast %c10_i32 : i32 to vector<2x128xi32>
    %24 = arith.cmpi slt, %17, %23 : vector<2x128xi32>
    %cst_16 = arith.constant -1.000000e+30 : f32
    %25 = vector.broadcast %cst_16 : f32 to vector<2x128xf32>
    %26 = arith.select %24, %15, %25 : vector<2x128xi1>, vector<2x128xf32>
    %cst_17 = arith.constant dense<0xFF800000> : vector<2xf32>
    %27 = vector.multi_reduction <maximumf>, %26, %cst_17 [1] : vector<2x128xf32> to vector<2xf32>
    %28 = vector.shape_cast %27 : vector<2xf32> to vector<2x1xf32>
    %29 = vector.broadcast %28 : vector<2x1xf32> to vector<2x128xf32>
    %30 = arith.subf %26, %29 : vector<2x128xf32>
    %31 = math.exp %30 : vector<2x128xf32>
    %cst_18 = arith.constant dense<0.000000e+00> : vector<2xf32>
    %32 = vector.multi_reduction <add>, %31, %cst_18 [1] : vector<2x128xf32> to vector<2xf32>
    %33 = vector.shape_cast %32 : vector<2xf32> to vector<2x1xf32>
    %34 = math.log %33 : vector<2x1xf32>
    %35 = vector.broadcast %34 : vector<2x1xf32> to vector<2x128xf32>
    %36 = arith.subf %30, %35 : vector<2x128xf32>
    %37 = arith.mulf %22, %36 : vector<2x128xf32>
    %cst_19 = arith.constant dense<0.000000e+00> : vector<2xf32>
    %38 = vector.multi_reduction <add>, %37, %cst_19 [1] : vector<2x128xf32> to vector<2xf32>
    %39 = vector.shape_cast %38 : vector<2xf32> to vector<2x1xf32>
    %cst_20 = arith.constant 0.000000e+00 : f32
    %40 = vector.broadcast %cst_20 : f32 to vector<2x1xf32>
    %41 = arith.subf %40, %39 : vector<2x1xf32>
    %c0_21 = arith.constant 0 : index
    %c0_22 = arith.constant 0 : index
    %42 = vector.load %arg8[%c0_21, %c0_22] : memref<2x1xf32, #tpu.memory_space<vmem>>, vector<2x1xf32>
    tpu.vector_store %arg8[%c0_21, %c0_22], %41 {strides = array<i32>} : memref<2x1xf32, #tpu.memory_space<vmem>>, vector<2x1xf32>,
    return
  }
  func.func @transform_0(%arg0: i32) -> (i32, i32) {
    %c0_i32 = arith.constant 0 : i32
    %c0_i32_0 = arith.constant 0 : i32
    return %arg0, %c0_i32 : i32, i32
  }
  func.func @transform_1(%arg0: i32) -> (i32, i32) {
    %c0_i32 = arith.constant 0 : i32
    %c0_i32_0 = arith.constant 0 : i32
    %c0_i32_1 = arith.constant 0 : i32
    return %c0_i32, %c0_i32_0 : i32, i32
  }
  func.func @transform_2(%arg0: i32) -> (i32, i32) {
    %c0_i32 = arith.constant 0 : i32
    %c0_i32_0 = arith.constant 0 : i32
    %c0_i32_1 = arith.constant 0 : i32
    return %c0_i32, %c0_i32_0 : i32, i32
  }
  func.func @transform_3(%arg0: i32) -> (i32, i32) {
    %c0_i32 = arith.constant 0 : i32
    %c0_i32_0 = arith.constant 0 : i32
    %c0_i32_1 = arith.constant 0 : i32
    return %c0_i32, %c0_i32_0 : i32, i32
  }
  func.func @transform_4(%arg0: i32) -> (i32, i32) {
    %c0_i32 = arith.constant 0 : i32
    %c0_i32_0 = arith.constant 0 : i32
    %c0_i32_1 = arith.constant 0 : i32
    return %c0_i32, %c0_i32_0 : i32, i32
  }
  func.func @transform_5(%arg0: i32) -> (i32, i32) {
    %c0_i32 = arith.constant 0 : i32
    %c0_i32_0 = arith.constant 0 : i32
    return %arg0, %c0_i32 : i32, i32
  }
  func.func @transform_6(%arg0: i32) -> (i32, i32) {
    %c0_i32 = arith.constant 0 : i32
    %c0_i32_0 = arith.constant 0 : i32
    return %arg0, %c0_i32 : i32, i32
  }
  func.func @transform_7(%arg0: i32) -> (i32, i32) {
    %c0_i32 = arith.constant 0 : i32
    %c0_i32_0 = arith.constant 0 : i32
    return %arg0, %c0_i32 : i32, i32
  }
}

</mosaic_0001>

<bundles_post_ra>
// kernel: tile.10
= control target key start
LH: loop header
LB: loop body
LE: loop exit
PB: predicated region body
PF: predicated region fallthrough
CT: control target
= control target key end

     0   :  { %s28_s0 = inlined_call_operand.vmem [shape: f32[32], index: 0, kind: input, shape index: {}]   ;;  %s29_s1 = inlined_call_operand.vmem [shape: f32[16,32], index: 1, kind: output, shape index: {}]  }
   0x1   :  { %v4_v0 = vld [vmem:[%s28_s0] ss:$0 sm:$0xff] }
   0x2   :  { %5 = vst [vmem:[%s29_s1] sm:$0xff] %v4_v0 }
   0x3   :  { %8 = vst [vmem:[%s29_s1 + $0x8] sm:$0xff] %v4_v0 }

// kernel: tile.11
= control target key start
LH: loop header
LB: loop body
LE: loop exit
PB: predicated region body
PF: predicated region fallthrough
CT: control target
= control target key end

     0   :  { %s56_s8 = smov 96   ;;  %s57_s11 = smov 32   ;;  %vm3_vm0 = vcmask 261120   ;;  %vm9_vm1 = vcmask 1048320   ;;  %vm15_vm2 = vcmask 785920   ;;  %vm21_vm3 = vcmask 523520   ;;  %s93_s0 = inlined_call_operand.vmem [shape: f32[16,32], index: 0, kind: input, shape index: {}]   ;;  %s94_s1 = inlined_call_operand.vmem [shape: f32[1,512], index: 1, kind: output, shape index: {}]  }
   0x1   :  { %v47_v0 = vld [vmem:[%s93_s0 + $0x3] ss:$4 sm:$0xf]   ;;  %v49_v1 = vld [vmem:[%s93_s0 + $0x1] ss:$4 sm:$0xf]  }
   0x2   :  { %7 = vrot.lane.b32.xlu0 %v47_v0, %s56_s8  ;;  %19 = vrot.lane.b32.xlu1 %v49_v1, %s57_s11  ;;  %v48_v2 = vld [vmem:[%s93_s0 + $0x2] ss:$4 sm:$0xf]   ;;  %s58_s14 = smov 64  }
   0x3   :  { %v2_v3 = vld [vmem:[%s93_s0] ss:$4 sm:$0xf]  }
   0x4   :  { %4 = vst.msk [vmem:[#allocation0] ss:$8 sm:$0xf] %vm3_vm0, %v2_v3  }
   0xa   :  { %13 = vrot.lane.b32.xlu0 %v48_v2, %s58_s14 }
  0x74   :  { %v8_v4 = vpop.permute.xlu0 %7   ;;  %v20_v5 = vpop.permute.xlu1 %19  }
  0x75   :  { %10 = vst.msk [vmem:[#allocation0] ss:$8 sm:$0xf] %vm9_vm1, %v8_v4  }
  0x7c   :  { %v14_v6 = vpop.permute.xlu0 %13  }
  0x7d   :  { %16 = vst.msk [vmem:[#allocation0] ss:$8 sm:$0xf] %vm15_vm2, %v14_v6  }
  0x7e   :  { %22 = vst.msk [vmem:[#allocation0] ss:$8 sm:$0xf] %vm21_vm3, %v20_v5  }
  0x85   :  { %v25_v7 = vld [vmem:[#allocation0] sm:$0x1]  ;;  %v30_v8 = vld [vmem:[#allocation0 + $0x8] sm:$0x1]  ;;  %v36_v9 = vld [vmem:[#allocation0 + $0x10] sm:$0x1] }
  0x86   :  { %28 = vst [vmem:[%s94_s1] sm:$0x1] %v25_v7  ;;  %v42_v10 = vld [vmem:[#allocation0 + $0x18] sm:$0x1] }
  0x87   :  { %50 = vst [vmem:[%s94_s1 + $0x1] sm:$0x1] %v30_v8 }
  0x88   :  { %51 = vst [vmem:[%s94_s1 + $0x2] sm:$0x1] %v36_v9 }
  0x89   :  { %52 = vst [vmem:[%s94_s1 + $0x3] sm:$0x1] %v42_v10 }

// kernel: _train_impl.1
= control target key start
LH: loop header
LB: loop body
LE: loop exit
PB: predicated region body
PF: predicated region fallthrough
CT: control target
= control target key end

     0   :  { %vm390_vm0 = vcmask 1043456   ;;  %vm383_vm1 = vcmask 719872   ;;  %s2064_s0 = inlined_call_operand.vmem [shape: bf16[32,216], index: 0, kind: input, shape index: {}]   ;;  %s2065_s1 = inlined_call_operand.vmem [shape: bf16[216,512], index: 1, kind: input, shape index: {}]   ;;  %s2066_s2 = inlined_call_operand.vmem [shape: f32[1,512], index: 2, kind: input, shape index: {}]   ;;  %s2067_s3 = inlined_call_operand.vmem [shape: bf16[512,128], index: 3, kind: input, shape index: {}]   ;;  %s2068_s4 = inlined_call_operand.vmem [shape: f32[1,128], index: 4, kind: input, shape index: {}]   ;;  %s2069_s5 = inlined_call_operand.vmem [shape: s32[2,1], index: 5, kind: input, shape index: {}]   ;;  %s2070_s6 = inlined_call_operand.hbm [shape: f32[2,128], index: 6, kind: output, shape index: {0}]   ;;  %s2071_s7 = inlined_call_operand.vmem [shape: f32[2,1], index: 7, kind: output, shape index: {1}]  }
   0x1   :  { %v1158_v0 = vld [vmem:[%s2065_s1 + $0xe0] sm:$0xf]  ;;  %v1423_v1 = vld [vmem:[%s2065_s1 + $0xec] sm:$0xf0]  ;;  %v1421_v2 = vld [vmem:[%s2065_s1 + $0xe4] sm:$0xf] }
   0x2   :  { %v1159_v3 = vor.u32 %v1423_v1, %v1158_v0  ;;  %v1160_v4 = vld [vmem:[%s2065_s1 + $0xf0] sm:$0xf0]  ;;  %v83_v5 = vld [vmem:[%s2065_s1 + $0x1a0] sm:$0xff]  ;;  %v1419_v9 = vld [vmem:[%s2065_s1 + $0xcc] sm:$0xf0] }
   0x3   :  { %v1142_v6 = vld [vmem:[%s2065_s1 + $0xc0] sm:$0xf]  ;;  %v1163_v7 = vor.u32 %v1421_v2, %v1160_v4  ;;  %v272_v8 = vunpack.c.h.b16 %v83_v5  ;;  %v1417_v10 = vld [vmem:[%s2065_s1 + $0xc4] sm:$0xf]  ;;  %v1144_v11 = vld [vmem:[%s2065_s1 + $0xd0] sm:$0xf0]  ;;  %v271_v12 = vunpack.c.l.b16 %v83_v5 }
   0x4   :  { %403 = vmatpush.bf16.msra.mxu0 %v1159_v3  ;;  %v1143_v13 = vor.u32 %v1419_v9, %v1142_v6  ;;  %v1441_v14 = vld [vmem:[%s2065_s1 + $0x184] sm:$0xf]  ;;  %v1240_v15 = vld [vmem:[%s2065_s1 + $0x190] sm:$0xf0]  ;;  %v1147_v17 = vor.u32 %v1417_v10, %v1144_v11  ;;  %v1126_v19 = vld [vmem:[%s2065_s1 + $0xa0] sm:$0xf] }
   0x5   :  { %441 = vmatpush.bf16.msra.mxu2 %v1163_v7  ;;  %v328_v16 = vpack.c.b16 %v272_v8, %v272_v8  ;;  %v327_v18 = vpack.c.b16 %v271_v12, %v271_v12  ;;  %v1415_v20 = vld [vmem:[%s2065_s1 + $0xac] sm:$0xf0]  ;;  %v1413_v21 = vld [vmem:[%s2065_s1 + $0xa4] sm:$0xf]  ;;  %v1128_v22 = vld [vmem:[%s2065_s1 + $0xb0] sm:$0xf0]  ;;  %v1243_v27 = vor.u32 %v1441_v14, %v1240_v15 }
   0x6   :  { %v1238_v23 = vld [vmem:[%s2065_s1 + $0x180] sm:$0xf]  ;;  %v1443_v24 = vld [vmem:[%s2065_s1 + $0x18c] sm:$0xf0]  ;;  %v1127_v28 = vor.u32 %v1415_v20, %v1126_v19  ;;  %v1437_v29 = vld [vmem:[%s2065_s1 + $0x164] sm:$0xf]  ;;  %v1131_v31 = vor.u32 %v1413_v21, %v1128_v22 }
   0x7   :  { %v395_v25 = vsel %vm390_vm0, %v328_v16, 0  ;;  %v392_v26 = vsel %vm390_vm0, %v327_v18, 0  ;;  %v1224_v30 = vld [vmem:[%s2065_s1 + $0x170] sm:$0xf0]  ;;  %v1239_v32 = vor.u32 %v1443_v24, %v1238_v23  ;;  %v1110_v33 = vld [vmem:[%s2065_s1 + $0x80] sm:$0xf] }
   0x8   :  { %462 = vmatpush.bf16.msra.mxu3 %v395_v25  ;;  %404 = vmatpush.bf16.msra.mxu0 %v1143_v13  ;;  %v1411_v34 = vld [vmem:[%s2065_s1 + $0x8c] sm:$0xf0]  ;;  %v1409_v35 = vld [vmem:[%s2065_s1 + $0x84] sm:$0xf]  ;;  %v1112_v36 = vld [vmem:[%s2065_s1 + $0x90] sm:$0xf0]  ;;  %v1227_v39 = vor.u32 %v1437_v29, %v1224_v30 }
   0x9   :  { %442 = vmatpush.bf16.msra.mxu2 %v1147_v17  ;;  %424 = vmatpush.bf16.msra.mxu1 %v392_v26  ;;  %v1222_v37 = vld [vmem:[%s2065_s1 + $0x160] sm:$0xf]  ;;  %v1439_v38 = vld [vmem:[%s2065_s1 + $0x16c] sm:$0xf0]  ;;  %v1111_v40 = vor.u32 %v1411_v34, %v1110_v33  ;;  %v1433_v41 = vld [vmem:[%s2065_s1 + $0x144] sm:$0xf]  ;;  %v1115_v43 = vor.u32 %v1409_v35, %v1112_v36 }
   0xa   :  { %v1208_v42 = vld [vmem:[%s2065_s1 + $0x150] sm:$0xf0]  ;;  %v1223_v44 = vor.u32 %v1439_v38, %v1222_v37  ;;  %v1094_v45 = vld [vmem:[%s2065_s1 + $0x60] sm:$0xf]  ;;  %v1407_v46 = vld [vmem:[%s2065_s1 + $0x6c] sm:$0xf0] }
   0xb   :  { %v1405_v47 = vld [vmem:[%s2065_s1 + $0x64] sm:$0xf]  ;;  %v1096_v48 = vld [vmem:[%s2065_s1 + $0x70] sm:$0xf0]  ;;  %v1206_v49 = vld [vmem:[%s2065_s1 + $0x140] sm:$0xf]  ;;  %v1211_v51 = vor.u32 %v1433_v41, %v1208_v42  ;;  %v1095_v52 = vor.u32 %v1407_v46, %v1094_v45 }
   0xc   :  { %463 = vmatpush.bf16.msra.mxu3 %v1243_v27  ;;  %405 = vmatpush.bf16.msra.mxu0 %v1127_v28  ;;  %v1435_v50 = vld [vmem:[%s2065_s1 + $0x14c] sm:$0xf0]  ;;  %v1429_v53 = vld [vmem:[%s2065_s1 + $0x124] sm:$0xf]  ;;  %v1192_v54 = vld [vmem:[%s2065_s1 + $0x130] sm:$0xf0]  ;;  %v1099_v56 = vor.u32 %v1405_v47, %v1096_v48 }
   0xd   :  { %443 = vmatpush.bf16.msra.mxu2 %v1131_v31  ;;  %425 = vmatpush.bf16.msra.mxu1 %v1239_v32  ;;  %v1078_v55 = vld [vmem:[%s2065_s1 + $0x40] sm:$0xf]  ;;  %v1207_v57 = vor.u32 %v1435_v50, %v1206_v49  ;;  %v1403_v58 = vld [vmem:[%s2065_s1 + $0x4c] sm:$0xf0]  ;;  %v1401_v59 = vld [vmem:[%s2065_s1 + $0x44] sm:$0xf]  ;;  %v1195_v1 = vor.u32 %v1429_v53, %v1192_v54 }
   0xe   :  { %v84_v60 = vld [vmem:[%s2065_s1 + $0x1a8] sm:$0xff]  ;;  %v1080_v61 = vld [vmem:[%s2065_s1 + $0x50] sm:$0xf0]  ;;  %v1190_v62 = vld [vmem:[%s2065_s1 + $0x120] sm:$0xf]  ;;  %v1079_v2 = vor.u32 %v1403_v58, %v1078_v55 }
   0xf   :  { %v1431_v63 = vld [vmem:[%s2065_s1 + $0x12c] sm:$0xf0]  ;;  %v273_v0 = vunpack.c.l.b16 %v84_v60  ;;  %v1425_v3 = vld [vmem:[%s2065_s1 + $0x104] sm:$0xf]  ;;  %v1176_v4 = vld [vmem:[%s2065_s1 + $0x110] sm:$0xf0]  ;;  %v1083_v5 = vor.u32 %v1401_v59, %v1080_v61  ;;  %v274_v10 = vunpack.c.h.b16 %v84_v60 }
  0x10   :  { %464 = vmatpush.bf16.msra.mxu3 %v1227_v39  ;;  %406 = vmatpush.bf16.msra.mxu0 %v1111_v40  ;;  %v1191_v6 = vor.u32 %v1431_v63, %v1190_v62  ;;  %v1062_v7 = vld [vmem:[%s2065_s1 + $0x20] sm:$0xf]  ;;  %v1399_v8 = vld [vmem:[%s2065_s1 + $0x2c] sm:$0xf0]  ;;  %v1397_v9 = vld [vmem:[%s2065_s1 + $0x24] sm:$0xf]  ;;  %v1179_v17 = vor.u32 %v1425_v3, %v1176_v4 }
  0x11   :  { %444 = vmatpush.bf16.msra.mxu2 %v1115_v43  ;;  %426 = vmatpush.bf16.msra.mxu1 %v1223_v44  ;;  %v1064_v11 = vld [vmem:[%s2065_s1 + $0x30] sm:$0xf0]  ;;  %v1174_v12 = vld [vmem:[%s2065_s1 + $0x100] sm:$0xf]  ;;  %v1427_v13 = vld [vmem:[%s2065_s1 + $0x10c] sm:$0xf0]  ;;  %v329_v16 = vpack.c.b16 %v273_v0, %v273_v0  ;;  %v1063_v18 = vor.u32 %v1399_v8, %v1062_v7  ;;  %v330_v27 = vpack.c.b16 %v274_v10, %v274_v10 }
  0x12   :  { %v1166_v14 = vld [vmem:[%s2065_s1 + $0xe8] sm:$0xf]  ;;  %v1424_v15 = vld [vmem:[%s2065_s1 + $0xf4] sm:$0xf0]  ;;  %v1389_v19 = vld [vmem:[%s2064_s0 + $0x4] sm:$0xf]  ;;  %v1067_v22 = vor.u32 %v1397_v9, %v1064_v11  ;;  %v1175_v23 = vor.u32 %v1427_v13, %v1174_v12 }
  0x13   :  { %v1032_v20 = vld [vmem:[%s2064_s0 + $0x8] sm:$0xf0]  ;;  %v1046_v21 = vld [vmem:[%s2065_s1] sm:$0xf]  ;;  %v1395_v24 = vld [vmem:[%s2065_s1 + $0xc] sm:$0xf0]  ;;  %v1167_v29 = vor.u32 %v1424_v15, %v1166_v14 }
  0x14   :  { %465 = vmatpush.bf16.msra.mxu3 %v1211_v51  ;;  %407 = vmatpush.bf16.msra.mxu0 %v1095_v52  ;;  %v1393_v25 = vld [vmem:[%s2065_s1 + $0x4] sm:$0xf]  ;;  %v1048_v26 = vld [vmem:[%s2065_s1 + $0x10] sm:$0xf0]  ;;  %v1030_v28 = vld [vmem:[%s2064_s0] sm:$0xf]  ;;  %v1741_v32 = vor.u32 %v1389_v19, %v1032_v20  ;;  %v1047_v36 = vor.u32 %v1395_v24, %v1046_v21 }
  0x15   :  { %445 = vmatpush.bf16.msra.mxu2 %v1099_v56  ;;  %427 = vmatpush.bf16.msra.mxu1 %v1207_v57  ;;  %v1422_v30 = vld [vmem:[%s2065_s1 + $0xec] sm:$0xf]  ;;  %v1168_v31 = vld [vmem:[%s2065_s1 + $0xf8] sm:$0xf0]  ;;  %v1150_v33 = vld [vmem:[%s2065_s1 + $0xc8] sm:$0xf]  ;;  %v1051_v40 = vor.u32 %v1393_v25, %v1048_v26 }
  0x16   :  { %v1420_v34 = vld [vmem:[%s2065_s1 + $0xd4] sm:$0xf0]  ;;  %v398_v35 = vsel %vm390_vm0, %v329_v16, 0  ;;  %v1390_v37 = vld [vmem:[%s2064_s0 + $0x4] sm:$0xf0]  ;;  %v401_v41 = vsel %vm390_vm0, %v330_v27, 0  ;;  %v1171_v42 = vor.u32 %v1422_v30, %v1168_v31 }
  0x17   :  { %v1246_v38 = vld [vmem:[%s2065_s1 + $0x188] sm:$0xf]  ;;  %v1444_v39 = vld [vmem:[%s2065_s1 + $0x194] sm:$0xf0]  ;;  %v1151_v43 = vor.u32 %v1420_v34, %v1150_v33  ;;  %v1418_v44 = vld [vmem:[%s2065_s1 + $0xcc] sm:$0xf]  ;;  %v1771_v47 = vor.u32 %v1390_v37, %v1030_v28 }
  0x18   :  { %466 = vmatpush.bf16.msra.mxu3 %v1195_v1  ;;  %408 = vmatpush.bf16.msra.mxu0 %v1079_v2  ;;  %v1152_v45 = vld [vmem:[%s2065_s1 + $0xd8] sm:$0xf0]  ;;  %v1442_v46 = vld [vmem:[%s2065_s1 + $0x18c] sm:$0xf]  ;;  %v1134_v49 = vld [vmem:[%s2065_s1 + $0xa8] sm:$0xf]  ;;  %v1247_v51 = vor.u32 %v1444_v39, %v1246_v38 }
  0x19   :  { %446 = vmatpush.bf16.msra.mxu2 %v1083_v5  ;;  %428 = vmatpush.bf16.msra.mxu1 %v1191_v6  ;;  %v1248_v48 = vld [vmem:[%s2065_s1 + $0x198] sm:$0xf0]  ;;  %v1416_v50 = vld [vmem:[%s2065_s1 + $0xb4] sm:$0xf0]  ;;  %v1230_v52 = vld [vmem:[%s2065_s1 + $0x168] sm:$0xf]  ;;  %v1155_v54 = vor.u32 %v1418_v44, %v1152_v45 }
  0x1a   :  { %v1440_v53 = vld [vmem:[%s2065_s1 + $0x174] sm:$0xf0]  ;;  %v1251_v55 = vor.u32 %v1442_v46, %v1248_v48  ;;  %v1135_v56 = vor.u32 %v1416_v50, %v1134_v49  ;;  %v1414_v57 = vld [vmem:[%s2065_s1 + $0xac] sm:$0xf]  ;;  %v1136_v58 = vld [vmem:[%s2065_s1 + $0xb8] sm:$0xf0] }
  0x1b   :  { %v1438_v59 = vld [vmem:[%s2065_s1 + $0x16c] sm:$0xf]  ;;  %v1232_v60 = vld [vmem:[%s2065_s1 + $0x178] sm:$0xf0]  ;;  %v1118_v61 = vld [vmem:[%s2065_s1 + $0x88] sm:$0xf]  ;;  %v1231_v63 = vor.u32 %v1440_v53, %v1230_v52  ;;  %v1139_v2 = vor.u32 %v1414_v57, %v1136_v58 }
  0x1c   :  { %467 = vmatpush.bf16.msra.mxu3 %v1179_v17  ;;  %409 = vmatpush.bf16.msra.mxu0 %v1063_v18  ;;  %v1412_v62 = vld [vmem:[%s2065_s1 + $0x94] sm:$0xf0]  ;;  %v1214_v0 = vld [vmem:[%s2065_s1 + $0x148] sm:$0xf]  ;;  %v1391_v3 = vld [vmem:[%s2064_s0 + $0x14] sm:$0xf]  ;;  %v1235_v4 = vor.u32 %v1438_v59, %v1232_v60 }
  0x1d   :  { %447 = vmatpush.bf16.msra.mxu2 %v1067_v22  ;;  %429 = vmatpush.bf16.msra.mxu1 %v1175_v23  ;;  %v1436_v1 = vld [vmem:[%s2065_s1 + $0x154] sm:$0xf0]  ;;  %v1119_v5 = vor.u32 %v1412_v62, %v1118_v61  ;;  %v1410_v6 = vld [vmem:[%s2065_s1 + $0x8c] sm:$0xf]  ;;  %v1120_v7 = vld [vmem:[%s2065_s1 + $0x98] sm:$0xf0] }
  0x1e   :  { %v1102_v8 = vld [vmem:[%s2065_s1 + $0x68] sm:$0xf]  ;;  %v1408_v9 = vld [vmem:[%s2065_s1 + $0x74] sm:$0xf0]  ;;  %v1215_v10 = vor.u32 %v1436_v1, %v1214_v0  ;;  %v1434_v11 = vld [vmem:[%s2065_s1 + $0x14c] sm:$0xf] }
  0x1f   :  { %1254 = vmatmul.msk.bf16.vlgmr.msra.gmra.mxu3 %vm383_vm1, %v1741_v32  ;;  %v1216_v12 = vld [vmem:[%s2065_s1 + $0x158] sm:$0xf0] }
  0x20   :  { %500 = vmatpush.bf16.msrb.mxu3 %v398_v35  ;;  %410 = vmatpush.bf16.msra.mxu0 %v1047_v36  ;;  %v1040_v13 = vld [vmem:[%s2064_s0 + $0x18] sm:$0xf0] }
  0x21   :  { %479 = vmatpush.bf16.msrb.mxu1 %v1167_v29  ;;  %448 = vmatpush.bf16.msra.mxu2 %v1051_v40 }
  0x22   :  { %1252 = vmatmul.msk.bf16.vlgmr.msra.gmra.mxu1 %vm383_vm1, %v1741_v32 }
  0x23   :  { %411 = vmatmul.bf16.vlgmr.msra.gmra.mxu0 %v1771_v47 }
  0x24   :  { %517 = vmatpush.bf16.msrb.mxu0 %v1171_v42  ;;  %501 = vmatpush.bf16.msrb.mxu3 %v1247_v51 }
  0x25   :  { %538 = vmatpush.bf16.msrb.mxu2 %v401_v41  ;;  %480 = vmatpush.bf16.msrb.mxu1 %v1151_v43 }
  0x26   :  { %449 = vmatmul.bf16.vlgmr.msra.gmra.mxu2 %v1771_v47 }
  0x28   :  { %518 = vmatpush.bf16.msrb.mxu0 %v1155_v54  ;;  %502 = vmatpush.bf16.msrb.mxu3 %v1231_v63 }
  0x29   :  { %539 = vmatpush.bf16.msrb.mxu2 %v1251_v55  ;;  %481 = vmatpush.bf16.msrb.mxu1 %v1135_v56 }
  0x2a   :  { %13 = vsyncpa [#allocation3], 0  ;;  %v1123_v14 = vor.u32 %v1410_v6, %v1120_v7  ;;  %v1198_v15 = vld [vmem:[%s2065_s1 + $0x128] sm:$0xf]  ;;  %v1432_v16 = vld [vmem:[%s2065_s1 + $0x134] sm:$0xf0]  ;;  %v1103_v17 = vor.u32 %v1408_v9, %v1102_v8  ;;  %v1219_v18 = vor.u32 %v1434_v11, %v1216_v12  ;;  %v1043_v22 = vor.u32 %v1391_v3, %v1040_v13 }
  0x2b   :  { %v1406_v19 = vld [vmem:[%s2065_s1 + $0x6c] sm:$0xf]  ;;  %v1104_v20 = vld [vmem:[%s2065_s1 + $0x78] sm:$0xf0]  ;;  %v1086_v21 = vld [vmem:[%s2065_s1 + $0x48] sm:$0xf]  ;;  %v1199_v28 = vor.u32 %v1432_v16, %v1198_v15 }
  0x2c   :  { %519 = vmatpush.bf16.msrb.mxu0 %v1139_v2  ;;  %503 = vmatpush.bf16.msrb.mxu3 %v1215_v10  ;;  %v1404_v23 = vld [vmem:[%s2065_s1 + $0x54] sm:$0xf0]  ;;  %v1430_v24 = vld [vmem:[%s2065_s1 + $0x12c] sm:$0xf]  ;;  %v1200_v25 = vld [vmem:[%s2065_s1 + $0x138] sm:$0xf0]  ;;  %v1107_v29 = vor.u32 %v1406_v19, %v1104_v20 }
  0x2d   :  { %540 = vmatpush.bf16.msrb.mxu2 %v1235_v4  ;;  %482 = vmatpush.bf16.msrb.mxu1 %v1119_v5  ;;  %v1038_v26 = vld [vmem:[%s2064_s0 + $0x10] sm:$0xf]  ;;  %v1392_v27 = vld [vmem:[%s2064_s0 + $0x14] sm:$0xf0]  ;;  %v1182_v30 = vld [vmem:[%s2065_s1 + $0x108] sm:$0xf]  ;;  %v1087_v33 = vor.u32 %v1404_v23, %v1086_v21  ;;  %v1203_v36 = vor.u32 %v1430_v24, %v1200_v25 }
  0x2e   :  { %v1428_v31 = vld [vmem:[%s2065_s1 + $0x114] sm:$0xf0]  ;;  %v1402_v34 = vld [vmem:[%s2065_s1 + $0x4c] sm:$0xf]  ;;  %v1088_v35 = vld [vmem:[%s2065_s1 + $0x58] sm:$0xf0]  ;;  %v1039_v38 = vor.u32 %v1392_v27, %v1038_v26 }
  0x2f   :  { %v1070_v37 = vld [vmem:[%s2065_s1 + $0x28] sm:$0xf]  ;;  %1255 = vmatmul.msk.bf16.gmra.mxu3 %vm383_vm1, %v1043_v22  ;;  %v1400_v39 = vld [vmem:[%s2065_s1 + $0x34] sm:$0xf0]  ;;  %v1426_v40 = vld [vmem:[%s2065_s1 + $0x10c] sm:$0xf]  ;;  %v1183_v42 = vor.u32 %v1428_v31, %v1182_v30  ;;  %v1091_v43 = vor.u32 %v1402_v34, %v1088_v35 }
  0x30   :  { %520 = vmatpush.bf16.msrb.mxu0 %v1123_v14  ;;  %v1184_v41 = vld [vmem:[%s2065_s1 + $0x118] sm:$0xf0]  ;;  %504 = vmatpush.bf16.msrb.mxu3 %v1199_v28  ;;  %v1071_v44 = vor.u32 %v1400_v39, %v1070_v37  ;;  %v1398_v45 = vld [vmem:[%s2065_s1 + $0x2c] sm:$0xf]  ;;  %v1054_v49 = vld [vmem:[%s2065_s1 + $0x8] sm:$0xf] }
  0x31   :  { %483 = vmatpush.bf16.msrb.mxu1 %v1103_v17  ;;  %541 = vmatpush.bf16.msrb.mxu2 %v1219_v18  ;;  %v1072_v46 = vld [vmem:[%s2065_s1 + $0x38] sm:$0xf0]  ;;  %v1187_v48 = vor.u32 %v1426_v40, %v1184_v41  ;;  %v1396_v50 = vld [vmem:[%s2065_s1 + $0x14] sm:$0xf0]  ;;  %v1394_v53 = vld [vmem:[%s2065_s1 + $0xc] sm:$0xf] }
  0x32   :  { %1253 = vmatmul.msk.bf16.gmra.mxu1 %vm383_vm1, %v1043_v22  ;;  %v1075_v51 = vor.u32 %v1398_v45, %v1072_v46  ;;  %v1055_v52 = vor.u32 %v1396_v50, %v1054_v49  ;;  %v1056_v54 = vld [vmem:[%s2065_s1 + $0x18] sm:$0xf0]  ;;  %v1451_v57 = vld [vmem:[%s2067_s3 + $0x30] sm:$0xff]  ;;  %v1937_v59 = vld [vmem:[%s2066_s2] sm:$0xf]  ;;  %vm719_vm2 = vcmask 1041409  }
  0x33   :  { %416 = vmatmul.bf16.gmra.mxu0 %v1039_v38  ;;  %v1059_v55 = vor.u32 %v1394_v53, %v1056_v54  ;;  %v1452_v56 = vld [vmem:[%s2067_s3 + $0x38] sm:$0xff]  ;;  %v1459_v60 = vld [vmem:[%s2067_s3 + $0x70] sm:$0xff]  ;;  %v1449_v62 = vld [vmem:[%s2067_s3 + $0x20] sm:$0xff]  ;;  %v87_v63 = vperm.slane %v1937_v59, 0  ;;  %v1956_v7 = vperm.slane %v1937_v59, 1  ;;  %vm988_vm4 = vcmask 1041408  }
  0x34   :  { %521 = vmatpush.bf16.msrb.mxu0 %v1107_v29  ;;  %505 = vmatpush.bf16.msrb.mxu3 %v1183_v42  ;;  %v1458_v1 = vld [vmem:[%s2067_s3 + $0x68] sm:$0xff]  ;;  %v1448_v2 = vld [vmem:[%s2067_s3 + $0x18] sm:$0xff]  ;;  %v1457_v5 = vld [vmem:[%s2067_s3 + $0x60] sm:$0xff]  ;;  %vm1006_vm6 = vcmask 1024  }
  0x35   :  { %484 = vmatpush.bf16.msrb.mxu1 %v1087_v33  ;;  %542 = vmatpush.bf16.msrb.mxu2 %v1203_v36  ;;  %v1447_v9 = vld [vmem:[%s2067_s3 + $0x10] sm:$0xff]  ;;  %v1456_v13 = vld [vmem:[%s2067_s3 + $0x58] sm:$0xff]  ;;  %v1446_v16 = vld [vmem:[%s2067_s3 + $0x8] sm:$0xff] }
  0x36   :  { %454 = vmatmul.bf16.gmra.mxu2 %v1039_v38  ;;  %v1455_v20 = vld [vmem:[%s2067_s3 + $0x50] sm:$0xff]  ;;  %v1445_v26 = vld [vmem:[%s2067_s3] sm:$0xff]  ;;  %v1454_v29 = vld [vmem:[%s2067_s3 + $0x48] sm:$0xff] }
  0x37   :  { %v1468_v31 = vld [vmem:[%s2067_s3 + $0xb8] sm:$0xff]  ;;  %v1467_v41 = vld [vmem:[%s2067_s3 + $0xb0] sm:$0xff] }
  0x38   :  { %522 = vmatpush.bf16.msrb.mxu0 %v1091_v43  ;;  %v1476_v43 = vld [vmem:[%s2067_s3 + $0xf8] sm:$0xff]  ;;  %v1475_v53 = vld [vmem:[%s2067_s3 + $0xf0] sm:$0xff] }
  0x39   :  { %485 = vmatpush.bf16.msrb.mxu1 %v1071_v44  ;;  %543 = vmatpush.bf16.msrb.mxu2 %v1187_v48 }
  0x3c   :  { %523 = vmatpush.bf16.msrb.mxu0 %v1075_v51  ;;  %v1466_v51 = vld [vmem:[%s2067_s3 + $0xa8] sm:$0xff] }
  0x3d   :  { %486 = vmatpush.bf16.msrb.mxu1 %v1055_v52  ;;  %963 = vmatpush.bf16.msra.mxu2 %v1476_v43 }
  0x3f   :  { %1256 = vmatmul.msk.bf16.vlgmr.msrb.gmra.mxu3 %vm383_vm1, %v1741_v32 }
  0x40   :  { %524 = vmatpush.bf16.msrb.mxu0 %v1059_v55 }
  0x41   :  { %924 = vmatpush.bf16.msra.mxu1 %v1452_v56  ;;  %964 = vmatpush.bf16.msra.mxu2 %v1475_v53 }
  0x42   :  { %487 = vmatmul.bf16.vlgmr.msrb.gmra.mxu1 %v1771_v47 }
  0x43   :  { %525 = vmatmul.bf16.vlgmr.msrb.gmra.mxu0 %v1771_v47  ;;  %v1450_v47 = vld [vmem:[%s2067_s3 + $0x28] sm:$0xff] }
  0x44   :  { %950 = vmatpush.bf16.msra.mxu0 %v1468_v31 }
  0x45   :  { %925 = vmatpush.bf16.msra.mxu1 %v1451_v57 }
  0x46   :  { %1258 = vmatmul.msk.bf16.vlgmr.msrb.gmra.mxu2 %vm383_vm1, %v1741_v32  ;;  %v1460_v32 = vld [vmem:[%s2067_s3 + $0x78] sm:$0xff] }
  0x47   :  { %937 = vmatpush.bf16.msra.mxu3 %v1460_v32 }
  0x48   :  { %951 = vmatpush.bf16.msra.mxu0 %v1467_v41 }
  0x49   :  { %926 = vmatpush.bf16.msra.mxu1 %v1450_v47 }
  0x4b   :  { %938 = vmatpush.bf16.msra.mxu3 %v1459_v60  ;;  %v1998_v60 = vperm.slane %v1937_v59, 2 }
  0x4c   :  { %952 = vmatpush.bf16.msra.mxu0 %v1466_v51  ;;  %v1461_v51 = vld [vmem:[%s2067_s3 + $0x80] sm:$0xff] }
  0x4d   :  { %927 = vmatpush.bf16.msra.mxu1 %v1449_v62 }
  0x4f   :  { %1257 = vmatmul.msk.bf16.gmra.mxu3 %vm383_vm1, %v1043_v22 }
  0x50   :  { %939 = vmatpush.bf16.msra.mxu3 %v1458_v1  ;;  %v1474_v1 = vld [vmem:[%s2067_s3 + $0xe8] sm:$0xff] }
  0x51   :  { %928 = vmatpush.bf16.msra.mxu1 %v1448_v2  ;;  %965 = vmatpush.bf16.msra.mxu2 %v1474_v1 }
  0x52   :  { %492 = vmatmul.bf16.gmra.mxu1 %v1039_v38 }
  0x53   :  { %530 = vmatmul.bf16.gmra.mxu0 %v1039_v38  ;;  %v1453_v38 = vld [vmem:[%s2067_s3 + $0x40] sm:$0xff] }
  0x54   :  { %940 = vmatpush.bf16.msra.mxu3 %v1457_v5 }
  0x55   :  { %929 = vmatpush.bf16.msra.mxu1 %v1447_v9 }
  0x56   :  { %1259 = vmatmul.msk.bf16.gmra.mxu2 %vm383_vm1, %v1043_v22 }
  0x58   :  { %941 = vmatpush.bf16.msra.mxu3 %v1456_v13 }
  0x59   :  { %930 = vmatpush.bf16.msra.mxu1 %v1446_v16 }
  0x5c   :  { %942 = vmatpush.bf16.msra.mxu3 %v1455_v20 }
  0x5d   :  { %931 = vmatpush.bf16.msra.mxu1 %v1445_v26  ;;  %v1472_v26 = vld [vmem:[%s2067_s3 + $0xd8] sm:$0xff] }
  0x60   :  { %943 = vmatpush.bf16.msra.mxu3 %v1454_v29 }
  0x64   :  { %944 = vmatpush.bf16.msra.mxu3 %v1453_v38  ;;  %v1471_v38 = vld [vmem:[%s2067_s3 + $0xd0] sm:$0xff] }
  0x9f   :  { %v431_v58 = vpop.f32.mrf.mxu1 }
  0xa0   :  { %v412_v61 = vpop.f32.mrf.mxu0 }
  0xa1   :  { %v413_v3 = vadd.f32 %v412_v61, %v87_v63  ;;  %v1465_v61 = vld [vmem:[%s2067_s3 + $0xa0] sm:$0xff] }
  0xa2   :  { %v469_v0 = vpop.f32.mrf.mxu3  ;;  %953 = vmatpush.bf16.msra.mxu0 %v1465_v61 }
  0xa3   :  { %v432_v10 = vadd.f32 %v431_v58, %v413_v3 }
  0xa5   :  { %v555_v17 = vmax.f32 %v432_v10, 0.0  ;;  %v1464_v10 = vld [vmem:[%s2067_s3 + $0x98] sm:$0xff] }
  0xa6   :  { %954 = vmatpush.bf16.msra.mxu0 %v1464_v10 }
  0xa7   :  { %v433_v4 = vpop.f32.mrf.mxu1 }
  0xa8   :  { %v414_v8 = vpop.f32.mrf.mxu0 }
  0xa9   :  { %v450_v6 = vpop.f32.mrf.mxu2  ;;  %v415_v11 = vadd.f32 %v414_v8, %v87_v63 }
  0xaa   :  { %v471_v12 = vpop.f32.mrf.mxu3  ;;  %v451_v15 = vadd.f32 %v450_v6, %v1956_v7 }
  0xab   :  { %v434_v14 = vadd.f32 %v433_v4, %v415_v11 }
  0xac   :  { %v470_v23 = vadd.f32 %v469_v0, %v451_v15 }
  0xad   :  { %v559_v18 = vmax.f32 %v434_v14, 0.0 }
  0xae   :  { %v556_v33 = vmax.f32 %v470_v23, 0.0  ;;  %v1463_v23 = vld [vmem:[%s2067_s3 + $0x90] sm:$0xff] }
  0xaf   :  { %v436_v19 = vpop.f32.mrf.mxu1  ;;  %v571_v21 = vadd.f32 %v559_v18, %v555_v17  ;;  %v2015_v17 = vperm.slane %v1937_v59, 3  ;;  %955 = vmatpush.bf16.msra.mxu0 %v1463_v23 }
  0xb0   :  { %v417_v25 = vpop.f32.mrf.mxu0 }
  0xb1   :  { %v452_v22 = vpop.f32.mrf.mxu2  ;;  %v572_v30 = vrot.slane %v571_v21, 4  ;;  %v418_v35 = vadd.f32 %v417_v25, %v87_v63 }
  0xb2   :  { %v453_v24 = vadd.f32 %v452_v22, %v1956_v7  ;;  %v474_v28 = vpop.f32.mrf.mxu3 }
  0xb3   :  { %v573_v39 = vadd.f32 %v572_v30, %v571_v21  ;;  %v437_v45 = vadd.f32 %v436_v19, %v418_v35 }
  0xb4   :  { %v472_v27 = vadd.f32 %v471_v12, %v453_v24  ;;  %v1473_v12 = vld [vmem:[%s2067_s3 + $0xe0] sm:$0xff] }
  0xb5   :  { %v574_v49 = vrot.slane %v573_v39, 2  ;;  %v563_v55 = vmax.f32 %v437_v45, 0.0  ;;  %966 = vmatpush.bf16.msra.mxu2 %v1473_v12 }
  0xb6   :  { %v560_v34 = vmax.f32 %v472_v27, 0.0 }
  0xb7   :  { %v438_v36 = vpop.f32.mrf.mxu1  ;;  %v575_v32 = vadd.f32 %v574_v49, %v573_v39 }
  0xb8   :  { %v578_v37 = vadd.f32 %v560_v34, %v556_v33  ;;  %v419_v42 = vpop.f32.mrf.mxu0 }
  0xb9   :  { %v455_v40 = vpop.f32.mrf.mxu2  ;;  %v420_v46 = vadd.f32 %v419_v42, %v87_v63  ;;  %v576_v6 = vrot.slane %v575_v32, 1  ;;  %967 = vmatpush.bf16.msra.mxu2 %v1472_v26 }
  0xba   :  { %v579_v44 = vrot.slane %v578_v37, 4  ;;  %v476_v48 = vpop.f32.mrf.mxu3  ;;  %v456_v52 = vadd.f32 %v455_v40, %v1956_v7 }
  0xbb   :  { %v439_v50 = vadd.f32 %v438_v36, %v420_v46  ;;  %v577_v18 = vadd.f32 %v576_v6, %v575_v32  ;;  %v1462_v36 = vld [vmem:[%s2067_s3 + $0x88] sm:$0xff] }
  0xbc   :  { %v580_v54 = vadd.f32 %v579_v44, %v578_v37  ;;  %v475_v62 = vadd.f32 %v474_v28, %v456_v52  ;;  %956 = vmatpush.bf16.msra.mxu0 %v1462_v36 }
  0xbd   :  { %v567_v56 = vmax.f32 %v439_v50, 0.0  ;;  %v627_v31 = vpack.c.bf16 %v577_v18, %v577_v18  ;;  %968 = vmatpush.bf16.msra.mxu2 %v1471_v38 }
  0xbe   :  { %v581_v2 = vrot.slane %v580_v54, 2 }
  0xbf   :  { %v488_v57 = vpop.f32.mrf.mxu1  ;;  %v599_v47 = vadd.f32 %v567_v56, %v563_v55  ;;  %v711_v46 = vunpack.c.l.b16 %v627_v31 }
  0xc0   :  { %v526_v0 = vpop.f32.mrf.mxu0  ;;  %v489_v9 = vadd.f32 %v488_v57, %v1998_v60  ;;  %v582_v13 = vadd.f32 %v581_v2, %v580_v54  ;;  %v1470_v54 = vld [vmem:[%s2067_s3 + $0xc8] sm:$0xff]  ;;  %957 = vmatpush.bf16.msra.mxu0 %v1461_v51 }
  0xc1   :  { %v457_v58 = vpop.f32.mrf.mxu2  ;;  %v600_v3 = vrot.slane %v599_v47, 4  ;;  %v527_v29 = vadd.f32 %v526_v0, %v2015_v17  ;;  %969 = vmatpush.bf16.msra.mxu2 %v1470_v54 }
  0xc2   :  { %v458_v63 = vadd.f32 %v457_v58, %v1956_v7  ;;  %v507_v5 = vpop.f32.mrf.mxu3  ;;  %v564_v7 = vmax.f32 %v475_v62, 0.0  ;;  %v583_v27 = vrot.slane %v582_v13, 1 }
  0xc3   :  { %v601_v8 = vadd.f32 %v600_v3, %v599_v47  ;;  %v508_v20 = vadd.f32 %v507_v5, %v489_v9  ;;  %v1469_v3 = vld [vmem:[%s2067_s3 + $0xc0] sm:$0xff] }
  0xc4   :  { %v477_v4 = vadd.f32 %v476_v48, %v458_v63  ;;  %v584_v39 = vadd.f32 %v583_v27, %v582_v13 }
  0xc5   :  { %v602_v14 = vrot.slane %v601_v8, 2  ;;  %v557_v34 = vmax.f32 %v508_v20, 0.0  ;;  %970 = vmatpush.bf16.msra.mxu2 %v1469_v3  ;;  %v977_v3 = vlaneseq }
  0xc6   :  { %v568_v11 = vmax.f32 %v477_v4, 0.0  ;;  %v628_v55 = vpack.c.bf16 %v584_v39, %v584_v39 }
  0xc7   :  { %v490_v15 = vpop.f32.mrf.mxu1  ;;  %v603_v19 = vadd.f32 %v602_v14, %v601_v8 }
  0xc8   :  { %v606_v16 = vadd.f32 %v568_v11, %v564_v7  ;;  %v491_v22 = vadd.f32 %v490_v15, %v1998_v60  ;;  %v528_v25 = vpop.f32.mrf.mxu0  ;;  %v712_v5 = vunpack.c.l.b16 %v628_v55 }
  0xc9   :  { %v545_v21 = vpop.f32.mrf.mxu2  ;;  %v604_v59 = vrot.slane %v603_v19, 1  ;;  %v529_v45 = vadd.f32 %v528_v25, %v2015_v17 }
  0xca   :  { %v607_v24 = vrot.slane %v606_v16, 4  ;;  %v509_v30 = vpop.f32.mrf.mxu3  ;;  %v546_v44 = vadd.f32 %v545_v21, %v527_v29 }
  0xcb   :  { %v605_v33 = vadd.f32 %v604_v59, %v603_v19  ;;  %v510_v35 = vadd.f32 %v509_v30, %v491_v22 }
  0xcc   :  { %v608_v28 = vadd.f32 %v607_v24, %v606_v16  ;;  %v558_v47 = vmax.f32 %v546_v44, 0.0 }
  0xcd   :  { %v631_v40 = vpack.c.bf16 %v605_v33, %v605_v33  ;;  %v561_v41 = vmax.f32 %v510_v35, 0.0 }
  0xce   :  { %v609_v37 = vrot.slane %v608_v28, 2 }
  0xcf   :  { %v493_v42 = vpop.f32.mrf.mxu1  ;;  %v715_v48 = vunpack.c.l.b16 %v631_v40  ;;  %v585_v49 = vadd.f32 %v561_v41, %v557_v34 }
  0xd0   :  { %v610_v43 = vadd.f32 %v609_v37, %v608_v28  ;;  %v531_v56 = vpop.f32.mrf.mxu0  ;;  %v494_v0 = vadd.f32 %v493_v42, %v1998_v60 }
  0xd1   :  { %v547_v50 = vpop.f32.mrf.mxu2  ;;  %v720_v57 = vsel %vm719_vm2, %v715_v48, %v711_v46  ;;  %v586_v63 = vrot.slane %v585_v49, 4  ;;  %v532_v14 = vadd.f32 %v531_v56, %v2015_v17 }
  0xd2   :  { %v611_v52 = vrot.slane %v610_v43, 1  ;;  %v548_v53 = vadd.f32 %v547_v50, %v529_v45  ;;  %v512_v61 = vpop.f32.mrf.mxu3  ;;  %v724_v62 = vpack.c.b16 %v720_v57, %v720_v57 }
  0xd3   :  { %v587_v8 = vadd.f32 %v586_v63, %v585_v49  ;;  %v513_v9 = vadd.f32 %v512_v61, %v494_v0 }
  0xd4   :  { %v612_v32 = vadd.f32 %v611_v52, %v610_v43  ;;  %v562_v58 = vmax.f32 %v548_v53, 0.0  ;;  %932 = vmatmul.bf16.vlgmr.msra.gmra.mxu1 %v724_v62 }
  0xd5   :  { %v588_v16 = vrot.slane %v587_v8, 2  ;;  %v565_v18 = vmax.f32 %v513_v9, 0.0 }
  0xd6   :  { %v632_v1 = vpack.c.bf16 %v612_v32, %v612_v32  ;;  %v592_v2 = vadd.f32 %v562_v58, %v558_v47 }
  0xd7   :  { %v495_v4 = vpop.f32.mrf.mxu1  ;;  %v589_v25 = vadd.f32 %v588_v16, %v587_v8 }
  0xd8   :  { %v716_v6 = vunpack.c.l.b16 %v632_v1  ;;  %v496_v7 = vadd.f32 %v495_v4, %v1998_v60  ;;  %v593_v11 = vrot.slane %v592_v2, 4  ;;  %v533_v19 = vpop.f32.mrf.mxu0 }
  0xd9   :  { %v550_v10 = vpop.f32.mrf.mxu2  ;;  %v534_v24 = vadd.f32 %v533_v19, %v2015_v17  ;;  %v590_v31 = vrot.slane %v589_v25, 1 }
  0xda   :  { %v721_v12 = vsel %vm719_vm2, %v716_v6, %v712_v5  ;;  %v514_v15 = vpop.f32.mrf.mxu3  ;;  %v594_v21 = vadd.f32 %v593_v11, %v592_v2  ;;  %v551_v23 = vadd.f32 %v550_v10, %v532_v14  ;;  %v1482_v2 = vld [vmem:[%s2068_s4] ss:$0 sm:$0xff]  ;;  %v978_v5 = vand.u32 127, %v977_v3  ;;  %s1514_s4 = smov [#allocation2]  }
  0xdb   :  { %v725_v13 = vpack.c.b16 %v721_v12, %v721_v12  ;;  %v515_v20 = vadd.f32 %v514_v15, %v496_v7  ;;  %v591_v38 = vadd.f32 %v590_v31, %v589_v25  ;;  %v979_v14 = vld [vmem:[%s2069_s5] sm:$0x3]  ;;  %v1513_v15 = vmov 0   ;;  %s1013_s12 = sshll.u32 %s1514_s4, 4  ;;  %s1015_s5 = sshll.u32 %s2070_s6, 4  ;;  %s1014_s12 = int_to_ptr.vmem [resolvable:$true] %s1013_s12  ;;  %s1016_s5 = int_to_ptr.hbm [resolvable:$true] %s1015_s5 }
  0xdc   :  { %v595_v27 = vrot.slane %v594_v21, 2  ;;  %v566_v29 = vmax.f32 %v551_v23, 0.0  ;;  %vm986_vm3 = vcmp.lt.s32.totalorder %v978_v5, 10  ;;  %1480 = vset.pattern.permute.xlu1 %v1513_v15  ;;  %1481 = vset.pattern.permute.xlu0 %v1513_v15 }
  0xdd   :  { %945 = vmatmul.bf16.vlgmr.msra.gmra.mxu3 %v725_v13  ;;  %v569_v22 = vmax.f32 %v515_v20, 0.0  ;;  %v629_v43 = vpack.c.bf16 %v591_v38, %v591_v38  ;;  %981 = vperm.xlu1 %1480, %v979_v14  }
  0xde   :  { %v596_v34 = vadd.f32 %v595_v27, %v594_v21 }
  0xdf   :  { %v613_v26 = vadd.f32 %v569_v22, %v565_v18  ;;  %v713_v50 = vunpack.c.l.b16 %v629_v43 }
  0xe0   :  { %v597_v40 = vrot.slane %v596_v34, 1 }
  0xe1   :  { %v552_v60 = vpop.f32.mrf.mxu2  ;;  %v614_v28 = vrot.slane %v613_v26, 4 }
  0xe2   :  { %v553_v59 = vadd.f32 %v552_v60, %v534_v24  ;;  %v598_v45 = vadd.f32 %v597_v40, %v596_v34 }
  0xe3   :  { %v615_v33 = vadd.f32 %v614_v28, %v613_v26  ;;  %v1515_v26 = vmov 0.0  }
  0xe4   :  { %v570_v30 = vmax.f32 %v553_v59, 0.0  ;;  %v630_v52 = vpack.c.bf16 %v598_v45, %v598_v45 }
  0xe5   :  { %v616_v36 = vrot.slane %v615_v33, 2 }
  0xe6   :  { %v620_v35 = vadd.f32 %v570_v30, %v566_v29  ;;  %v714_v57 = vunpack.c.l.b16 %v630_v52 }
  0xe7   :  { %v617_v39 = vadd.f32 %v616_v36, %v615_v33 }
  0xe8   :  { %v621_v37 = vrot.slane %v620_v35, 4 }
  0xe9   :  { %v618_v42 = vrot.slane %v617_v39, 1 }
  0xea   :  { %v622_v41 = vadd.f32 %v621_v37, %v620_v35 }
  0xeb   :  { %v619_v44 = vadd.f32 %v618_v42, %v617_v39 }
  0xec   :  { %v623_v17 = vrot.slane %v622_v41, 2 }
  0xed   :  { %v633_v48 = vpack.c.bf16 %v619_v44, %v619_v44 }
  0xee   :  { %v624_v46 = vadd.f32 %v623_v17, %v622_v41 }
  0xef   :  { %v717_v51 = vunpack.c.l.b16 %v633_v48 }
  0xf0   :  { %v625_v49 = vrot.slane %v624_v46, 1 }
  0xf1   :  { %v722_v54 = vsel %vm719_vm2, %v717_v51, %v713_v50 }
  0xf2   :  { %v626_v53 = vadd.f32 %v625_v49, %v624_v46  ;;  %v726_v56 = vpack.c.b16 %v722_v54, %v722_v54 }
  0xf4   :  { %v634_v55 = vpack.c.bf16 %v626_v53, %v626_v53  ;;  %958 = vmatmul.bf16.vlgmr.msra.gmra.mxu0 %v726_v56 }
  0xf6   :  { %v718_v32 = vunpack.c.l.b16 %v634_v55 }
  0xf8   :  { %v723_v47 = vsel %vm719_vm2, %v718_v32, %v714_v57 }
  0xf9   :  { %v727_v58 = vpack.c.b16 %v723_v47, %v723_v47 }
  0xfb   :  { %971 = vmatmul.bf16.vlgmr.msra.gmra.mxu2 %v727_v58 }
 0x14f   :  { %v982_v23 = vpop.permute.xlu1 %981 }
 0x150   :  { %vm983_vm5 = vcmp.eq.s32.totalorder %v978_v5, %v982_v23 }
 0x151   :  { %v933_v61 = vpop.f32.mrf.mxu1  ;;  %v1388_v60 = vsel %vm983_vm5, 1.0, %v1515_v26 }
 0x152   :  { %v934_v4 = vadd.f32 %v1482_v2, %v933_v61 }
 0x159   :  { %v935_v62 = vpop.f32.mrf.mxu1 }
 0x160   :  { %v946_v63 = vpop.f32.mrf.mxu3 }
 0x161   :  { %v947_v6 = vadd.f32 %v946_v63, %v934_v4 }
 0x168   :  { %v948_v0 = vpop.f32.mrf.mxu3 }
 0x171   :  { %v959_v1 = vpop.f32.mrf.mxu0 }
 0x172   :  { %v960_v9 = vadd.f32 %v959_v1, %v947_v6 }
 0x179   :  { %v961_v8 = vpop.f32.mrf.mxu0 }
 0x17e   :  { %v972_v10 = vpop.f32.mrf.mxu2 }
 0x17f   :  { %v973_v7 = vadd.f32 %v972_v10, %v960_v9 }
 0x181   :  { %976 = vst [vmem:[#allocation2] sm:$0x3] %v973_v7  ;;  %v987_v11 = vsel %vm986_vm3, %v973_v7, -1e+30 }
 0x182   :  { %v989_v12 = vsel %vm988_vm4, %v987_v11, -inf  ;;  %1018 = dma.vmem_to_hbm [thread:$0]  %s1014_s12, 32, %s1016_s5, [#allocation3]  }
 0x183   :  { %990 = vmax.xlane.f32.xlu0 %v989_v12 }
 0x186   :  { %v974_v13 = vpop.f32.mrf.mxu2 }
 0x1f6   :  { %v991_v16 = vpop.xlane.xlu0 %990 }
 0x1f7   :  { %v992_v18 = vsub.f32 %v987_v11, %v991_v16 }
 0x1f9   :  { %v993_v19 = vmul.f32 1.442695, %v992_v18 }
 0x1fb   :  { %1483 = vpow2.f32 %v993_v19 }
 0x201   :  { %v1484_v20 = vpop.eup %1483 }
 0x202   :  { %v995_v21 = vsel %vm988_vm4, %v1484_v20, 0.0 }
 0x203   :  { %996 = vadd.xlane.f32.xlu0 %v995_v21 }
 0x276   :  { %v997_v22 = vpop.xlane.xlu0 %996 }
 0x277   :  { %1485 = vlog2.f32 %v997_v22 }
 0x27d   :  { %v1486_v24 = vpop.eup %1485 }
 0x27e   :  { %v999_v25 = vmul.f32 0.6931472, %v1486_v24 }
 0x280   :  { %v1000_v27 = vsub.f32 %v992_v18, %v999_v25 }
 0x282   :  { %v1001_v59 = vmul.f32 %v1388_v60, %v1000_v27 }
 0x284   :  { %v1002_v28 = vsel %vm988_vm4, %v1001_v59, 0.0 }
 0x285   :  { %1003 = vadd.xlane.f32.xlu1 %v1002_v28 }
 0x2f8   :  { %v1004_v29 = vpop.xlane.xlu1 %1003 }
 0x2f9   :  { %v1005_v30 = vsub.f32 0.0, %v1004_v29 }
 0x2fb   :  { %1007 = vst.msk [vmem:[%s2071_s7] sm:$0x3] %vm1006_vm6, %v1005_v30 }
 0x2fc   :  { %1511 = dma.done.wait [#allocation3], 32  }
 0x2fd   :  { %1512 = vsyncadd [#allocation3], 4294967264 }
 0x2fe   :  { %1027 = vsyncpa [#allocation3], 1 }

</bundles_post_ra>
